<compile_context>
chip_gen: v7x
topology: tpu7x:2x2x1
jax: 0.10.0
libtpu: 0.0.40
codegen_flags: <defaults>
</compile_context>

<pallas_src>
import functools

import jax
import jax.numpy as jnp
from jax.experimental import pallas as pl
from jax.experimental.pallas import tpu as pltpu

N_FLOWS = 3
T_MAX = 10.0  # parity with the module constructor; unused in forward

_LANE = 128                            # lane granularity
_TARGET_BLOCK_BYTES = 2 * 1024 * 1024  # ~2 MiB/buffer; v5e-safe, near roofline


def _affine_kernel(params_ref, z_ref, out_ref, *, upcast):
    """out = total_scale * z + total_shift (one FMA per element).

    params_ref : SMEM f32[2] -> [total_scale, total_shift]
    z_ref/out_ref : VMEM tiles of identical shape/dtype.
    """
    scale = params_ref[0]
    shift = params_ref[1]
    z = z_ref[...]
    if upcast:
        out_ref[...] = (scale * z.astype(jnp.float32) + shift).astype(out_ref.dtype)
    else:
        out_ref[...] = scale * z + shift


def _pick_blocks(rows, cols, itemsize, sub, target_bytes):
    """Pick (block_rows, block_cols): each dim is either the full extent
    (always legal) or a (sub, 128)-aligned tile, sized to ~target_bytes."""
    target_elems = max(_LANE * sub, target_bytes // itemsize)
    # Lane (last) dim.
    if cols <= _LANE or cols * itemsize <= target_bytes:
        block_c = cols                                   # full extent
    else:
        block_c = max(_LANE, min(target_elems, cols) // _LANE * _LANE)
    # Sublane (second-last) dim, from the remaining budget.
    row_budget = max(sub, target_elems // block_c)
    if rows <= row_budget or rows <= sub:
        block_r = rows                                   # full extent
    else:
        block_r = row_budget // sub * sub
    return block_r, block_c


@functools.partial(jax.jit, static_argnames=("target_block_bytes",))
def transformed_exponential_forward(z, log_scale, shift, *,
                                    target_block_bytes=_TARGET_BLOCK_BYTES):
    """TransformedExponential.forward: apply the stack of (affine) flows to z.

    z: [batch, seq_len, 1]; returns F(z) with the same shape/dtype.
    """
    orig_shape = z.shape
    n = z.size
    if n == 0:                                   # degenerate input guard
        return z

    # ---- Fold the chain of affine flows into one (scale, shift) pair ----
    # z_{i+1} = exp(log_scale_i) * z_i + shift_i, composed in forward order.
    scales = jnp.exp(log_scale.astype(jnp.float32))
    shifts = shift.astype(jnp.float32)
    total_scale = jnp.float32(1.0)
    total_shift = jnp.float32(0.0)
    for i in range(log_scale.shape[0]):          # static, tiny unrolled loop
        total_scale = scales[i] * total_scale
        total_shift = scales[i] * total_shift + shifts[i]
    params = jnp.stack([total_scale, total_shift])      # f32[2] -> SMEM

    # ---- 2-D working view (pure reshape of a contiguous array: no copy) ----
    itemsize = jnp.dtype(z.dtype).itemsize
    sub = max(8, 32 // itemsize)         # f32: 8, bf16: 16, int8/fp8: 32
    if n % _LANE == 0:
        rows, cols = n // _LANE, _LANE   # lane-dense repack -> unmasked 128-wide vst
    else:
        rows, cols = orig_shape[0], n // orig_shape[0]   # natural [batch, seq] view
    z2d = z.reshape(rows, cols)

    block_r, block_c = _pick_blocks(rows, cols, itemsize, sub, target_block_bytes)
    grid = (pl.cdiv(rows, block_r), pl.cdiv(cols, block_c))

    kernel = functools.partial(_affine_kernel, upcast=z.dtype != jnp.float32)

    out2d = pl.pallas_call(
        kernel,
        out_shape=jax.ShapeDtypeStruct((rows, cols), z.dtype),
        grid=grid,
        in_specs=[
            pl.BlockSpec(memory_space=pltpu.MemorySpace.SMEM),      # folded params
            pl.BlockSpec((block_r, block_c), lambda i, j: (i, j)),  # z tiles
        ],
        out_specs=pl.BlockSpec((block_r, block_c), lambda i, j: (i, j)),
        compiler_params=pltpu.CompilerParams(
            dimension_semantics=("parallel", "parallel")),
    )(params, z2d)

    return out2d.reshape(orig_shape)


def _reference_forward(z, log_scale, shift):
    out = z.astype(jnp.float32)
    for i in range(log_scale.shape[0]):
        out = jnp.exp(log_scale[i]) * out + shift[i]
    return out.astype(z.dtype)


if __name__ == "__main__":
    key = jax.random.PRNGKey(0)
    k1, k2, k3 = jax.random.split(key, 3)

    # Deterministic per-flow parameters (synthetic init, no checkpoint).
    log_scale = jnp.array([0.10, -0.05, 0.20], dtype=jnp.float32)
    shift = jnp.array([0.00, 0.30, -0.10], dtype=jnp.float32)

    # Inputs shaped [batch_size, seq_len, 1], exactly as forward() expects.
    cases = [
        # tiny: whole array is one full-extent block
        (jax.random.exponential(k1, (2, 8, 1), dtype=jnp.float32), {}),
        # ragged seq_len (not 128-aligned): natural [batch, seq] view, no padding
        (jax.random.exponential(k2, (4, 300, 1), dtype=jnp.float32), {}),
        # lane-dense repack path with a forced multi-block pipelined grid
        (jax.random.exponential(k3, (32, 512, 1), dtype=jnp.float32),
         dict(target_block_bytes=4096)),
    ]

    for z, kw in cases:
        out = jax.block_until_ready(
            transformed_exponential_forward(z, log_scale, shift, **kw))
        ref = _reference_forward(z, log_scale, shift)
        assert out.shape == z.shape, (out.shape, z.shape)
        assert out.dtype == z.dtype, (out.dtype, z.dtype)
        assert jnp.allclose(out, ref, atol=1e-5, rtol=1e-5), \
            f"mismatch vs reference for shape {z.shape}"

    print("KERNEL_OK")
</pallas_src>

<mosaic_0001>
module attributes {stable_mosaic.version = 11 : i64} {
  func.func @_affine_kernel(%arg0: i32, %arg1: i32, %arg2: memref<2xf32, #tpu.memory_space<smem>>, %arg3: memref<2x8xf32, #tpu.memory_space<vmem>>, %arg4: memref<2x8xf32, #tpu.memory_space<vmem>>) attributes {dimension_semantics = [#tpu.dimension_semantics<parallel>, #tpu.dimension_semantics<parallel>], iteration_bounds = array<i64: 1, 1>, scalar_prefetch = 0 : i64, scratch_operands = 0 : i64, tpu.core_type = #tpu.core_type<tc>, window_params = [{transform_indices = @transform_0, window_bounds = array<i64: 2>}, {transform_indices = @transform_1, window_bounds = array<i64: 2, 8>}, {transform_indices = @transform_2, window_bounds = array<i64: 2, 8>}]} {
    %c0 = arith.constant 0 : index
    %0 = memref.load %arg2[%c0] : memref<2xf32, #tpu.memory_space<smem>>
    %c1 = arith.constant 1 : index
    %1 = memref.load %arg2[%c1] : memref<2xf32, #tpu.memory_space<smem>>
    %c0_0 = arith.constant 0 : index
    %c0_1 = arith.constant 0 : index
    %2 = vector.load %arg3[%c0_0, %c0_1] : memref<2x8xf32, #tpu.memory_space<vmem>>, vector<2x8xf32>
    %3 = vector.broadcast %0 : f32 to vector<2x8xf32>
    %4 = arith.mulf %3, %2 : vector<2x8xf32>
    %5 = vector.broadcast %1 : f32 to vector<2x8xf32>
    %6 = arith.addf %4, %5 : vector<2x8xf32>
    %c0_2 = arith.constant 0 : index
    %c0_3 = arith.constant 0 : index
    %7 = vector.load %arg4[%c0_2, %c0_3] : memref<2x8xf32, #tpu.memory_space<vmem>>, vector<2x8xf32>
    tpu.vector_store %arg4[%c0_2, %c0_3], %6 {strides = array<i32>} : memref<2x8xf32, #tpu.memory_space<vmem>>, vector<2x8xf32>,
    return
  }
  func.func @transform_0(%arg0: i32, %arg1: i32) -> i32 {
    %c0_i32 = arith.constant 0 : i32
    %c0_i32_0 = arith.constant 0 : i32
    return %c0_i32 : i32
  }
  func.func @transform_1(%arg0: i32, %arg1: i32) -> (i32, i32) {
    %c0_i32 = arith.constant 0 : i32
    return %arg0, %arg1 : i32, i32
  }
  func.func @transform_2(%arg0: i32, %arg1: i32) -> (i32, i32) {
    %c0_i32 = arith.constant 0 : i32
    return %arg0, %arg1 : i32, i32
  }
}

</mosaic_0001>

<bundles_post_ra>
// kernel: transformed_exponential_forward.1
= control target key start
LH: loop header
LB: loop body
LE: loop exit
PB: predicated region body
PF: predicated region fallthrough
CT: control target
= control target key end

     0   :  { %7 = vsyncpa [#allocation4], 0  ;;  %s125_s0 = inlined_call_operand.vmem [shape: f32[2], index: 0, kind: input, shape index: {}]   ;;  %s126_s1 = inlined_call_operand.vmem [shape: f32[2,8], index: 1, kind: input, shape index: {}]   ;;  %s127_s2 = inlined_call_operand.hbm [shape: f32[2,8], index: 2, kind: output, shape index: {}]  }
   0x1   :  { %8 = vsyncpa [#allocation3], 0  ;;  %s15_s11 = sshll.u32 %s125_s0, 4  ;;  %s16_s11 = int_to_ptr.vmem [resolvable:$true] %s15_s11 }
   0x2   :  { %s52_s12 = scalar_lea.vmem %s16_s11, 16  ;;  %p57_p1 = scmp.lt.s32.totalorder %s16_s11, %s16_s11 }
   0x3   :  { %p53_p0 = scmp.ne.s32.totalorder %s16_s11, %s52_s12  ;;  %p58_p2 = scmp.lt.s32.totalorder %s52_s12, %s52_s12 }
   0x5   :  { %p59_p3 = por %p58_p2, %p57_p1 }
   0x7   :  { %p60_p4 = pnand %p59_p3, %p53_p0 }
   0x9   :  { %63 = shalt.err (!%p60_p4)
}
   0xa   :  { %s90_s13 = smov [#allocation2]  }
   0xb   :  { %18 = dma.vmem_to_smem %s16_s11, 16, %s90_s13, [#allocation4]  }
   0xc   :  { %86 = dma.done.wait [#allocation4], 16  }
   0xd   :  { %87 = vsyncadd [#allocation4], 4294967280 }
   0xe   :  { %24 = sfence }
   0xf   :  { %s25_s14 = sld [smem:[#allocation2]]  ;;  %s49_s15 = sld [smem:[#allocation2 + $0x1]]  ;;  %v27_v0 = vld [vmem:[%s126_s1] sm:$0x3]  ;;  %vm32_vm0 = vcmask 58368  }
  0x10   :  { %s91_s0 = smov [#allocation5]  }
  0x11   :  { %s40_s18 = sshll.u32 %s91_s0, 4  ;;  %s41_s18 = int_to_ptr.vmem [resolvable:$true] %s40_s18 }
  0x12   :  { %s64_s19 = scalar_lea.vmem %s41_s18, 32  ;;  %p69_p6 = scmp.lt.s32.totalorder %s41_s18, %s41_s18 }
  0x13   :  { %p65_p5 = scmp.ne.s32.totalorder %s41_s18, %s64_s19  ;;  %p70_p7 = scmp.lt.s32.totalorder %s64_s19, %s64_s19 }
  0x15   :  { %v28_v1 = vstv %s25_s14  ;;  %v30_v2 = vstv %s49_s15  ;;  %p71_p8 = por %p70_p7, %p69_p6 }
  0x16   :  { %v29_v3 = vmul.f32 %v28_v1, %v27_v0 }
  0x17   :  { %p72_p9 = pnand %p71_p8, %p65_p5 }
  0x18   :  { %v31_v4 = vadd.f32 %v30_v2, %v29_v3 }
  0x1a   :  { %33 = vst.msk [vmem:[#allocation5] sm:$0x3] %vm32_vm0, %v31_v4 }
  0x1b   :  { %75 = shalt.err (!%p72_p9)
}
  0x1c   :  { %s76_s1 = scalar_lea.hbm %s127_s2, 32 }
  0x1d   :  { %p77_p10 = scmp.ne.s32.totalorder %s127_s2, %s76_s1  ;;  %p80_p11 = scmp.lt.u32.totalorder %s76_s1, %s127_s2 }
  0x1f   :  { %p82_p12 = pnand %p80_p11, %p77_p10 }
  0x21   :  { %85 = shalt.err (!%p82_p12)
}
  0x22   :  { %43 = dma.vmem_to_hbm [thread:$0]  %s41_s18, 32, %s127_s2, [#allocation3]  }
  0x23   :  { %88 = dma.done.wait [#allocation3], 32  }
  0x24   :  { %89 = vsyncadd [#allocation3], 4294967264 }
  0x25   :  { %47 = vsyncpa [#allocation3], 1 }
  0x26   :  { %48 = vsyncpa [#allocation4], 1 }

</bundles_post_ra>
